<compile_context>
chip_gen: v5e
topology: v5e:2x2
jax: 0.10.0
libtpu: 0.0.40
codegen_flags: <defaults>
</compile_context>

<pallas_src>
import jax
import jax.numpy as jnp
from jax import lax
from jax.experimental import pallas as pl
from jax.experimental.pallas import tpu as pltpu


def _mm(a, b, ca, cb):
    """lax.dot_general contracting a's dim `ca` with b's dim `cb`, f32 accumulate."""
    return lax.dot_general(
        a, b,
        dimension_numbers=(((ca,), (cb,)), ((), ())),
        preferred_element_type=jnp.float32,
    )


def double_dnf_kernel(x_ref, w1c_ref, w1d_ref, w2c_ref, w2dt_ref,
                      b1c_ref, b1d_ref, b2c_ref, b2d_ref, o_ref):
    op_dt = w1c_ref.dtype                    # matmul operand dtype (f32 or bf16)

    x = x_ref[...]                           # (tb, p): batch-tiled input block
    # dnf1 conjunctions + tanh:  W1c (c1,p) . x^T          -> (c1, tb)   batch on lanes
    h = jnp.tanh(_mm(w1c_ref[...], x, 1, 1) + b1c_ref[...])
    # dnf1 disjunctions + tanh:  W1d (d1,c1) . h            -> (d1, tb)
    h = jnp.tanh(_mm(w1d_ref[...], h.astype(op_dt), 1, 0) + b1d_ref[...])
    # dnf2 conjunctions + tanh:  W2c (c2,d1) . h            -> (c2, tb)
    h = jnp.tanh(_mm(w2c_ref[...], h.astype(op_dt), 1, 0) + b2c_ref[...])
    # dnf2 disjunctions (no tanh):  h^T . W2d^T             -> (tb, cls) row-major, unpadded
    o_ref[...] = (_mm(h.astype(op_dt), w2dt_ref[...], 0, 0)
                  + b2d_ref[...]).astype(o_ref.dtype)


def double_dnf_forward(x, w1c, w1d, w2c, w2d, delta=1.0, tb=None,
                       use_bf16_matmul=False):
    batch, num_preds = x.shape
    num_classes = w2d.shape[0]
    f32 = jnp.float32
    delta = jnp.asarray(delta, f32)

    # --- hoist the weight-derived biases out of the kernel (computed once, kept f32) ---
    def semi_bias(w, conjunction):
        aw = jnp.abs(w.astype(f32))
        mx = jnp.max(aw, axis=1)
        sm = jnp.sum(aw, axis=1)
        return delta * ((mx - sm) if conjunction else (sm - mx))    # (out,)

    b1c = semi_bias(w1c, True)[:, None]      # (c1, 1)  broadcasts along lanes (batch)
    b1d = semi_bias(w1d, False)[:, None]     # (d1, 1)
    b2c = semi_bias(w2c, True)[:, None]      # (c2, 1)
    b2d = semi_bias(w2d, False)[None, :]     # (1, cls) final layer is row-major

    # Matmul operand dtype. bf16 only pays on v6e/v7x; keep f32 on v5e and when exact
    # f32 reference matching is required.  Bias add + accumulation always stay f32.
    op_dt = jnp.bfloat16 if use_bf16_matmul else f32
    x_k = x.astype(op_dt)
    w1c_k = w1c.astype(op_dt)
    w1d_k = w1d.astype(op_dt)
    w2c_k = w2c.astype(op_dt)
    w2dt_k = w2d.T.astype(op_dt)             # pre-transposed once in the wrapper

    # --- batch tiling: big tiles to amortize per-grid-step overhead, but keep >= 2
    #     tiles when the batch allows so v7x's two TensorCores both get work ---
    if tb is None:
        half = -(-batch // 2)                                # ceil(batch / 2)
        tb = max(128, min(1024, ((half + 127) // 128) * 128))
    assert tb % 128 == 0, "batch tile must keep internal activations lane-dense"

    padded_batch = pl.cdiv(batch, tb) * tb
    if padded_batch != batch:
        x_k = jnp.pad(x_k, ((0, padded_batch - batch), (0, 0)))
    grid = (padded_batch // tb,)

    const = lambda i: (0, 0)   # weights / biases: same block every step -> VMEM-resident
    out = pl.pallas_call(
        double_dnf_kernel,
        out_shape=jax.ShapeDtypeStruct((padded_batch, num_classes), f32),
        grid=grid,
        in_specs=[
            pl.BlockSpec((tb, num_preds), lambda i: (i, 0)),  # x: batch-tiled, double-buffered
            pl.BlockSpec(w1c_k.shape, const),
            pl.BlockSpec(w1d_k.shape, const),
            pl.BlockSpec(w2c_k.shape, const),
            pl.BlockSpec(w2dt_k.shape, const),
            pl.BlockSpec(b1c.shape, const),
            pl.BlockSpec(b1d.shape, const),
            pl.BlockSpec(b2c.shape, const),
            pl.BlockSpec(b2d.shape, const),
        ],
        out_specs=pl.BlockSpec((tb, num_classes), lambda i: (i, 0)),
        compiler_params=pltpu.CompilerParams(
            dimension_semantics=("parallel",),   # shard batch tiles across TCs (v7x)
        ),
    )(x_k, w1c_k, w1d_k, w2c_k, w2dt_k, b1c, b1d, b2c, b2d)

    return out[:batch]


def double_dnf_reference(x, w1c, w1d, w2c, w2d, delta=1.0):
    """Plain-JAX reference mirroring the PyTorch forward."""
    def semi(h, w, conj):
        aw = jnp.abs(w)
        bias = jnp.max(aw, 1) - jnp.sum(aw, 1) if conj else jnp.sum(aw, 1) - jnp.max(aw, 1)
        return h @ w.T + delta * bias[None, :]
    h = jnp.tanh(semi(x, w1c, True))
    h = jnp.tanh(semi(h, w1d, False))
    h = jnp.tanh(semi(h, w2c, True))
    return semi(h, w2d, False)


if __name__ == "__main__":
    # Small shapes consistent with the module's __init__; batch chosen so the wrapper's
    # tile heuristic yields a 2-tile grid (exercises pipelining + megacore sharding).
    batch = 512
    num_preds = 16
    num_conjuncts1 = 32
    num_disjuncts1 = 16
    num_conjuncts2 = 32
    num_classes = 8
    delta = 1.0

    key = jax.random.PRNGKey(0)
    kx, k1, k2, k3, k4 = jax.random.split(key, 5)

    # Deterministic "normal" weight init (mean 0, std 0.1), as in weight_init_type='normal'
    x = jax.random.normal(kx, (batch, num_preds), dtype=jnp.float32)
    w1c = 0.1 * jax.random.normal(k1, (num_conjuncts1, num_preds), dtype=jnp.float32)
    w1d = 0.1 * jax.random.normal(k2, (num_disjuncts1, num_conjuncts1), dtype=jnp.float32)
    w2c = 0.1 * jax.random.normal(k3, (num_conjuncts2, num_disjuncts1), dtype=jnp.float32)
    w2d = 0.1 * jax.random.normal(k4, (num_classes, num_conjuncts2), dtype=jnp.float32)

    out = double_dnf_forward(x, w1c, w1d, w2c, w2d, delta=delta)
    out = jax.block_until_ready(out)

    ref = double_dnf_reference(x, w1c, w1d, w2c, w2d, delta=delta)
    assert out.shape == (batch, num_classes)
    assert jnp.allclose(out, ref, atol=1e-5, rtol=1e-5), "mismatch vs reference"

    print("KERNEL_OK")
</pallas_src>

<mosaic_0001>
module attributes {stable_mosaic.version = 11 : i64} {
  func.func @double_dnf_kernel(%arg0: i32, %arg1: memref<256x16xf32, #tpu.memory_space<vmem>>, %arg2: memref<32x16xf32, #tpu.memory_space<vmem>>, %arg3: memref<16x32xf32, #tpu.memory_space<vmem>>, %arg4: memref<32x16xf32, #tpu.memory_space<vmem>>, %arg5: memref<32x8xf32, #tpu.memory_space<vmem>>, %arg6: memref<32x1xf32, #tpu.memory_space<vmem>>, %arg7: memref<16x1xf32, #tpu.memory_space<vmem>>, %arg8: memref<32x1xf32, #tpu.memory_space<vmem>>, %arg9: memref<1x8xf32, #tpu.memory_space<vmem>>, %arg10: memref<256x8xf32, #tpu.memory_space<vmem>>) attributes {dimension_semantics = [#tpu.dimension_semantics<parallel>], iteration_bounds = array<i64: 2>, scalar_prefetch = 0 : i64, scratch_operands = 0 : i64, tpu.core_type = #tpu.core_type<tc>, window_params = [{transform_indices = @transform_0, window_bounds = array<i64: 256, 16>}, {pipeline_mode = #tpu.pipeline_mode<synchronous>, transform_indices = @transform_1, window_bounds = array<i64: 32, 16>}, {pipeline_mode = #tpu.pipeline_mode<synchronous>, transform_indices = @transform_2, window_bounds = array<i64: 16, 32>}, {pipeline_mode = #tpu.pipeline_mode<synchronous>, transform_indices = @transform_3, window_bounds = array<i64: 32, 16>}, {pipeline_mode = #tpu.pipeline_mode<synchronous>, transform_indices = @transform_4, window_bounds = array<i64: 32, 8>}, {pipeline_mode = #tpu.pipeline_mode<synchronous>, transform_indices = @transform_5, window_bounds = array<i64: 32, 1>}, {pipeline_mode = #tpu.pipeline_mode<synchronous>, transform_indices = @transform_6, window_bounds = array<i64: 16, 1>}, {pipeline_mode = #tpu.pipeline_mode<synchronous>, transform_indices = @transform_7, window_bounds = array<i64: 32, 1>}, {pipeline_mode = #tpu.pipeline_mode<synchronous>, transform_indices = @transform_8, window_bounds = array<i64: 1, 8>}, {transform_indices = @transform_9, window_bounds = array<i64: 256, 8>}]} {
    %c0 = arith.constant 0 : index
    %c0_0 = arith.constant 0 : index
    %0 = vector.load %arg1[%c0, %c0_0] : memref<256x16xf32, #tpu.memory_space<vmem>>, vector<256x16xf32>
    %c0_1 = arith.constant 0 : index
    %c0_2 = arith.constant 0 : index
    %1 = vector.load %arg2[%c0_1, %c0_2] : memref<32x16xf32, #tpu.memory_space<vmem>>, vector<32x16xf32>
    %cst = arith.constant dense<0.000000e+00> : vector<32x256xf32>
    %2 = tpu.matmul %1, %0, %cst {dimension_numbers = #tpu.dot_dimension_numbers<[1], [1], [0], [0], [0, 0, 1, 0], [], []>} : vector<32x16xf32>, vector<256x16xf32>, vector<32x256xf32> -> vector<32x256xf32>
    %c0_3 = arith.constant 0 : index
    %c0_4 = arith.constant 0 : index
    %3 = vector.load %arg6[%c0_3, %c0_4] : memref<32x1xf32, #tpu.memory_space<vmem>>, vector<32x1xf32>
    %4 = vector.broadcast %3 : vector<32x1xf32> to vector<32x256xf32>
    %5 = arith.addf %2, %4 : vector<32x256xf32>
    %6 = math.tanh %5 : vector<32x256xf32>
    %c0_5 = arith.constant 0 : index
    %c0_6 = arith.constant 0 : index
    %7 = vector.load %arg3[%c0_5, %c0_6] : memref<16x32xf32, #tpu.memory_space<vmem>>, vector<16x32xf32>
    %cst_7 = arith.constant dense<0.000000e+00> : vector<16x256xf32>
    %8 = tpu.matmul %7, %6, %cst_7 {dimension_numbers = #tpu.dot_dimension_numbers<[1], [0], [0], [1], [0, 0, 1, 1], [], []>} : vector<16x32xf32>, vector<32x256xf32>, vector<16x256xf32> -> vector<16x256xf32>
    %c0_8 = arith.constant 0 : index
    %c0_9 = arith.constant 0 : index
    %9 = vector.load %arg7[%c0_8, %c0_9] : memref<16x1xf32, #tpu.memory_space<vmem>>, vector<16x1xf32>
    %10 = vector.broadcast %9 : vector<16x1xf32> to vector<16x256xf32>
    %11 = arith.addf %8, %10 : vector<16x256xf32>
    %12 = math.tanh %11 : vector<16x256xf32>
    %c0_10 = arith.constant 0 : index
    %c0_11 = arith.constant 0 : index
    %13 = vector.load %arg4[%c0_10, %c0_11] : memref<32x16xf32, #tpu.memory_space<vmem>>, vector<32x16xf32>
    %cst_12 = arith.constant dense<0.000000e+00> : vector<32x256xf32>
    %14 = tpu.matmul %13, %12, %cst_12 {dimension_numbers = #tpu.dot_dimension_numbers<[1], [0], [0], [1], [0, 0, 1, 1], [], []>} : vector<32x16xf32>, vector<16x256xf32>, vector<32x256xf32> -> vector<32x256xf32>
    %c0_13 = arith.constant 0 : index
    %c0_14 = arith.constant 0 : index
    %15 = vector.load %arg8[%c0_13, %c0_14] : memref<32x1xf32, #tpu.memory_space<vmem>>, vector<32x1xf32>
    %16 = vector.broadcast %15 : vector<32x1xf32> to vector<32x256xf32>
    %17 = arith.addf %14, %16 : vector<32x256xf32>
    %18 = math.tanh %17 : vector<32x256xf32>
    %c0_15 = arith.constant 0 : index
    %c0_16 = arith.constant 0 : index
    %19 = vector.load %arg5[%c0_15, %c0_16] : memref<32x8xf32, #tpu.memory_space<vmem>>, vector<32x8xf32>
    %cst_17 = arith.constant dense<0.000000e+00> : vector<256x8xf32>
    %20 = tpu.matmul %18, %19, %cst_17 {dimension_numbers = #tpu.dot_dimension_numbers<[0], [0], [1], [1], [0, 1, 1, 1], [], []>} : vector<32x256xf32>, vector<32x8xf32>, vector<256x8xf32> -> vector<256x8xf32>
    %c0_18 = arith.constant 0 : index
    %c0_19 = arith.constant 0 : index
    %21 = vector.load %arg9[%c0_18, %c0_19] : memref<1x8xf32, #tpu.memory_space<vmem>>, vector<1x8xf32>
    %22 = vector.broadcast %21 : vector<1x8xf32> to vector<256x8xf32>
    %23 = arith.addf %20, %22 : vector<256x8xf32>
    %c0_20 = arith.constant 0 : index
    %c0_21 = arith.constant 0 : index
    %24 = vector.load %arg10[%c0_20, %c0_21] : memref<256x8xf32, #tpu.memory_space<vmem>>, vector<256x8xf32>
    tpu.vector_store %arg10[%c0_20, %c0_21], %23 {strides = array<i32>} : memref<256x8xf32, #tpu.memory_space<vmem>>, vector<256x8xf32>,
    return
  }
  func.func @transform_0(%arg0: i32) -> (i32, i32) {
    %c0_i32 = arith.constant 0 : i32
    %c0_i32_0 = arith.constant 0 : i32
    return %arg0, %c0_i32 : i32, i32
  }
  func.func @transform_1(%arg0: i32) -> (i32, i32) {
    %c0_i32 = arith.constant 0 : i32
    %c0_i32_0 = arith.constant 0 : i32
    %c0_i32_1 = arith.constant 0 : i32
    return %c0_i32, %c0_i32_0 : i32, i32
  }
  func.func @transform_2(%arg0: i32) -> (i32, i32) {
    %c0_i32 = arith.constant 0 : i32
    %c0_i32_0 = arith.constant 0 : i32
    %c0_i32_1 = arith.constant 0 : i32
    return %c0_i32, %c0_i32_0 : i32, i32
  }
  func.func @transform_3(%arg0: i32) -> (i32, i32) {
    %c0_i32 = arith.constant 0 : i32
    %c0_i32_0 = arith.constant 0 : i32
    %c0_i32_1 = arith.constant 0 : i32
    return %c0_i32, %c0_i32_0 : i32, i32
  }
  func.func @transform_4(%arg0: i32) -> (i32, i32) {
    %c0_i32 = arith.constant 0 : i32
    %c0_i32_0 = arith.constant 0 : i32
    %c0_i32_1 = arith.constant 0 : i32
    return %c0_i32, %c0_i32_0 : i32, i32
  }
  func.func @transform_5(%arg0: i32) -> (i32, i32) {
    %c0_i32 = arith.constant 0 : i32
    %c0_i32_0 = arith.constant 0 : i32
    %c0_i32_1 = arith.constant 0 : i32
    return %c0_i32, %c0_i32_0 : i32, i32
  }
  func.func @transform_6(%arg0: i32) -> (i32, i32) {
    %c0_i32 = arith.constant 0 : i32
    %c0_i32_0 = arith.constant 0 : i32
    %c0_i32_1 = arith.constant 0 : i32
    return %c0_i32, %c0_i32_0 : i32, i32
  }
  func.func @transform_7(%arg0: i32) -> (i32, i32) {
    %c0_i32 = arith.constant 0 : i32
    %c0_i32_0 = arith.constant 0 : i32
    %c0_i32_1 = arith.constant 0 : i32
    return %c0_i32, %c0_i32_0 : i32, i32
  }
  func.func @transform_8(%arg0: i32) -> (i32, i32) {
    %c0_i32 = arith.constant 0 : i32
    %c0_i32_0 = arith.constant 0 : i32
    %c0_i32_1 = arith.constant 0 : i32
    return %c0_i32, %c0_i32_0 : i32, i32
  }
  func.func @transform_9(%arg0: i32) -> (i32, i32) {
    %c0_i32 = arith.constant 0 : i32
    %c0_i32_0 = arith.constant 0 : i32
    return %arg0, %c0_i32 : i32, i32
  }
}

</mosaic_0001>

<bundles_post_ra>
// kernel: tpu_custom_call.1
= control target key start
LH: loop header
LB: loop body
LE: loop exit
PB: predicated region body
PF: predicated region fallthrough
CT: control target
= control target key end

     0   :  { %s1338_s30 = smov 0   ;;  %s1661_s0 = inlined_call_operand.vmem [shape: f32[512,16], index: 0, kind: input, shape index: {}]   ;;  %s1662_s1 = inlined_call_operand.vmem [shape: f32[32,16], index: 1, kind: input, shape index: {}]   ;;  %s1663_s2 = inlined_call_operand.vmem [shape: f32[16,32], index: 2, kind: input, shape index: {}]   ;;  %s1664_s3 = inlined_call_operand.vmem [shape: f32[32,16], index: 3, kind: input, shape index: {}]   ;;  %s1665_s4 = inlined_call_operand.vmem [shape: f32[32,8], index: 4, kind: input, shape index: {}]   ;;  %s1666_s5 = inlined_call_operand.vmem [shape: f32[32,1], index: 5, kind: input, shape index: {}]   ;;  %s1667_s6 = inlined_call_operand.vmem [shape: f32[16,1], index: 6, kind: input, shape index: {}]   ;;  %s1668_s7 = inlined_call_operand.vmem [shape: f32[32,1], index: 7, kind: input, shape index: {}]   ;;  %s1669_s8 = inlined_call_operand.vmem [shape: f32[1,8], index: 8, kind: input, shape index: {}]   ;;  %s1670_s9 = inlined_call_operand.vmem [shape: f32[512,8], index: 9, kind: output, shape index: {}]  }
   0x1 LB: > { %s1118_s10 = sadd.s32 4294967295, %s1285_s30   ;;  %p1122_p0 = scmp.ge.s32.totalorder %s1285_s30, 1  ;;  %s1285_s30 = sphi %s1338_s30, %s19_s30  }
   0x2   : > { %p288_p1 = scmp.lt.s32.totalorder %s1285_s30, 3 }
   0x4   : > { %p289_p2 = pnand %p1122_p0, %p288_p1 }
   0x5   : > { %s1123_s11 = sshll.u32 (!%p289_p2), %s1118_s10, 5 }
   0x6   : > { %292 = sbr.rel (%p289_p2) target bundleno = 997 (0x3e5), region = 56  ;;  %p325_p3 = scmp.lt.s32.totalorder (!%p289_p2), %s1123_s11, 63 }
   0xb   : > { %s1672_s11 = smov (!%p325_p3, %s1123_s11), 63  ;;  %vm396_vm0 = vcmask 130048   ;;  %v373_v18 = vld [vmem:[%s1666_s5 + $0x8] sm:$0xff]  ;;  %v375_v19 = vld [vmem:[%s1666_s5 + $0x18] sm:$0xff]  ;;  %v1287_v22 = vmov 0   ;;  %v372_v25 = vld [vmem:[%s1666_s5] sm:$0xff] }
   0xc   : > { %s1124_s12 = sshll.u32 %s1672_s11, 3  ;;  %1236 = vset.pattern.permute.xlu1 %v1287_v22  ;;  %1235 = vset.pattern.permute.xlu0 %v1287_v22  ;;  %v374_v26 = vld [vmem:[%s1666_s5 + $0x10] sm:$0xff]  ;;  %v646_v31 = vld [vmem:[%s1668_s7] sm:$0xff]  ;;  %v649_v36 = vld [vmem:[%s1668_s7 + $0x18] sm:$0xff]  ;;  %vm585_vm1 = vcmask 261120   ;;  %vm1029_vm2 = vcmask 64512  }
   0xd   : > { %s1354_s15 = scalar_lea.vmem %s1661_s0, %s1124_s12  ;;  %383 = vperm.xlu1 %1236, %v373_v18   ;;  %393 = vperm.xlu0 %1235, %v375_v19   ;;  %v647_v37 = vld [vmem:[%s1668_s7 + $0x8] sm:$0xff]  ;;  %v368_v40 = vld [vmem:[%s1662_s1] sm:$0xff]  ;;  %v370_v42 = vld [vmem:[%s1662_s1 + $0x10] sm:$0xff]  ;;  %s1552_s14 = scalar_lea.vmem %s1670_s9, %s1124_s12 }
   0xe   : > { %v351_v0 = vld [vmem:[%s1354_s15 + $0x78] sm:$0xff]  ;;  %v350_v2 = vld [vmem:[%s1354_s15 + $0x70] sm:$0xff]  ;;  %v349_v4 = vld [vmem:[%s1354_s15 + $0x68] sm:$0xff]  ;;  %1237 = vset.pattern.permute.xlu2 %v1287_v22 }
   0xf   : > { %v367_v1 = vld [vmem:[%s1354_s15 + $0xf8] sm:$0xff]  ;;  %1127 = vmatpush.xpose.msk.msra.mxu0 %vm396_vm0, %v351_v0  ;;  %v366_v3 = vld [vmem:[%s1354_s15 + $0xf0] sm:$0xff]  ;;  %v365_v5 = vld [vmem:[%s1354_s15 + $0xe8] sm:$0xff] }
  0x10   : > { %1147 = vmatpush.xpose.msk.msra.mxu1 %vm396_vm0, %v367_v1  ;;  %v348_v6 = vld [vmem:[%s1354_s15 + $0x60] sm:$0xff]  ;;  %v347_v8 = vld [vmem:[%s1354_s15 + $0x58] sm:$0xff]  ;;  %v346_v10 = vld [vmem:[%s1354_s15 + $0x50] sm:$0xff] }
  0x11   : > { %v364_v7 = vld [vmem:[%s1354_s15 + $0xe0] sm:$0xff]  ;;  %v363_v9 = vld [vmem:[%s1354_s15 + $0xd8] sm:$0xff]  ;;  %v362_v11 = vld [vmem:[%s1354_s15 + $0xd0] sm:$0xff] }
  0x12   : > { %v345_v12 = vld [vmem:[%s1354_s15 + $0x48] sm:$0xff]  ;;  %v344_v14 = vld [vmem:[%s1354_s15 + $0x40] sm:$0xff]  ;;  %v343_v16 = vld [vmem:[%s1354_s15 + $0x38] sm:$0xff] }
  0x13   : > { %1128 = vmatpush.xpose.msk.msra.mxu0 %vm396_vm0, %v350_v2  ;;  %v361_v13 = vld [vmem:[%s1354_s15 + $0xc8] sm:$0xff]  ;;  %v360_v15 = vld [vmem:[%s1354_s15 + $0xc0] sm:$0xff]  ;;  %v359_v17 = vld [vmem:[%s1354_s15 + $0xb8] sm:$0xff] }
  0x14   : > { %1148 = vmatpush.xpose.msk.msra.mxu1 %vm396_vm0, %v366_v3  ;;  %v342_v20 = vld [vmem:[%s1354_s15 + $0x30] sm:$0xff]  ;;  %v341_v23 = vld [vmem:[%s1354_s15 + $0x28] sm:$0xff]  ;;  %v340_v27 = vld [vmem:[%s1354_s15 + $0x20] sm:$0xff] }
  0x15   : > { %v358_v21 = vld [vmem:[%s1354_s15 + $0xb0] sm:$0xff]  ;;  %v357_v24 = vld [vmem:[%s1354_s15 + $0xa8] sm:$0xff]  ;;  %v356_v28 = vld [vmem:[%s1354_s15 + $0xa0] sm:$0xff]  ;;  %378 = vperm.xlu1 %1236, %v372_v25   ;;  %388 = vperm.xlu0 %1235, %v374_v26  }
  0x16   : > { %v339_v29 = vld [vmem:[%s1354_s15 + $0x18] sm:$0xff]  ;;  %v338_v32 = vld [vmem:[%s1354_s15 + $0x10] sm:$0xff]  ;;  %v337_v34 = vld [vmem:[%s1354_s15 + $0x8] sm:$0xff] }
  0x17   : > { %1129 = vmatpush.xpose.msk.msra.mxu0 %vm396_vm0, %v349_v4  ;;  %v355_v30 = vld [vmem:[%s1354_s15 + $0x98] sm:$0xff]  ;;  %v354_v33 = vld [vmem:[%s1354_s15 + $0x90] sm:$0xff]  ;;  %v353_v35 = vld [vmem:[%s1354_s15 + $0x88] sm:$0xff] }
  0x18   : > { %1149 = vmatpush.xpose.msk.msra.mxu1 %vm396_vm0, %v365_v5  ;;  %v336_v38 = vld [vmem:[%s1354_s15] sm:$0xff]  ;;  %v369_v41 = vld [vmem:[%s1662_s1 + $0x8] sm:$0xff]  ;;  %v371_v43 = vld [vmem:[%s1662_s1 + $0x18] sm:$0xff] }
  0x19   : > { %v352_v39 = vld [vmem:[%s1354_s15 + $0x80] sm:$0xff]  ;;  %v574_v52 = vld [vmem:[%s1667_s6 + $0x8] sm:$0xff]  ;;  %v648_v2 = vld [vmem:[%s1668_s7 + $0x10] sm:$0xff] }
  0x1a   : > { %582 = vperm.xlu2 %1237, %v574_v52   ;;  %v573_v56 = vld [vmem:[%s1667_s6] sm:$0xff] }
  0x1b   : > { %1130 = vmatpush.xpose.msk.msra.mxu0 %vm396_vm0, %v348_v6  ;;  %v642_v25 = vld [vmem:[%s1664_s3] sm:$0xff] }
  0x1c   : > { %1150 = vmatpush.xpose.msk.msra.mxu1 %vm396_vm0, %v364_v7 }
  0x1d   : > { %652 = vperm.xlu0 %1235, %v646_v31   ;;  %657 = vperm.xlu1 %1236, %v647_v37  }
  0x1f   : > { %1131 = vmatpush.xpose.msk.msra.mxu0 %vm396_vm0, %v347_v8 }
  0x20   : > { %1151 = vmatpush.xpose.msk.msra.mxu1 %vm396_vm0, %v363_v9  ;;  %v571_v9 = vld [vmem:[%s1663_s2] sm:$0xff] }
  0x22   : > { %577 = vperm.xlu2 %1237, %v573_v56  }
  0x23   : > { %1132 = vmatpush.xpose.msk.msra.mxu0 %vm396_vm0, %v346_v10 }
  0x24   : > { %1152 = vmatpush.xpose.msk.msra.mxu1 %vm396_vm0, %v362_v11 }
  0x25   : > { %667 = vperm.xlu0 %1235, %v649_v36  }
  0x27   : > { %1133 = vmatpush.xpose.msk.msra.mxu0 %vm396_vm0, %v345_v12  ;;  %v572_v12 = vld [vmem:[%s1663_s2 + $0x8] sm:$0xff] }
  0x28   : > { %1153 = vmatpush.xpose.msk.msra.mxu1 %vm396_vm0, %v361_v13 }
  0x2a   : > { %662 = vperm.xlu2 %1237, %v648_v2  }
  0x2b   : > { %1134 = vmatpush.xpose.msk.msra.mxu0 %vm396_vm0, %v344_v14 }
  0x2c   : > { %1154 = vmatpush.xpose.msk.msra.mxu1 %vm396_vm0, %v360_v15 }
  0x2f   : > { %1135 = vmatpush.xpose.msk.msra.mxu0 %vm396_vm0, %v343_v16 }
  0x30   : > { %1155 = vmatpush.xpose.msk.msra.mxu1 %vm396_vm0, %v359_v17 }
  0x33   : > { %1136 = vmatpush.xpose.msk.msra.mxu0 %vm396_vm0, %v342_v20 }
  0x34   : > { %1156 = vmatpush.xpose.msk.msra.mxu1 %vm396_vm0, %v358_v21 }
  0x37   : > { %1137 = vmatpush.xpose.msk.msra.mxu0 %vm396_vm0, %v341_v23 }
  0x38   : > { %1157 = vmatpush.xpose.msk.msra.mxu1 %vm396_vm0, %v357_v24 }
  0x3b   : > { %1138 = vmatpush.xpose.msk.msra.mxu0 %vm396_vm0, %v340_v27 }
  0x3c   : > { %1158 = vmatpush.xpose.msk.msra.mxu1 %vm396_vm0, %v356_v28  ;;  %v643_v28 = vld [vmem:[%s1664_s3 + $0x8] sm:$0xff] }
  0x3f   : > { %1139 = vmatpush.xpose.msk.msra.mxu0 %vm396_vm0, %v339_v29  ;;  %v644_v29 = vld [vmem:[%s1664_s3 + $0x10] sm:$0xff] }
  0x40   : > { %1159 = vmatpush.xpose.msk.msra.mxu1 %vm396_vm0, %v355_v30  ;;  %v645_v30 = vld [vmem:[%s1664_s3 + $0x18] sm:$0xff] }
  0x43   : > { %1140 = vmatpush.xpose.msk.msra.mxu0 %vm396_vm0, %v338_v32 }
  0x44   : > { %1160 = vmatpush.xpose.msk.msra.mxu1 %vm396_vm0, %v354_v33 }
  0x47   : > { %1141 = vmatpush.xpose.msk.msra.mxu0 %vm396_vm0, %v337_v34 }
  0x48   : > { %1161 = vmatpush.xpose.msk.msra.mxu1 %vm396_vm0, %v353_v35 }
  0x4b   : > { %1142 = vmatpush.xpose.msk.msra.mxu0 %vm396_vm0, %v336_v38 }
  0x4c   : > { %1162 = vmatpush.xpose.msk.msra.mxu1 %vm396_vm0, %v352_v39 }
  0x4e   : > { %1143 = vmatmul.msk.f32.vlgmr.msra.gmra.mxu0 %vm396_vm0, %v368_v40 }
  0x4f   : > { %1163 = vmatmul.msk.f32.vlgmr.msra.gmra.mxu1 %vm396_vm0, %v368_v40 }
  0x56   : > { %1144 = vmatmul.msk.f32.gmra.mxu0 %vm396_vm0, %v369_v41 }
  0x57   : > { %1164 = vmatmul.msk.f32.gmra.mxu1 %vm396_vm0, %v369_v41 }
  0x5e   : > { %1145 = vmatmul.msk.f32.gmra.mxu0 %vm396_vm0, %v370_v42 }
  0x5f   : > { %1165 = vmatmul.msk.f32.gmra.mxu1 %vm396_vm0, %v370_v42 }
  0x66   : > { %1146 = vmatmul.msk.f32.gmra.mxu0 %vm396_vm0, %v371_v43 }
  0x67   : > { %1166 = vmatmul.msk.f32.gmra.mxu1 %vm396_vm0, %v371_v43 }
  0x74   : > { %v583_v13 = vpop.permute.xlu2 %582 }
  0x7c   : > { %v578_v16 = vpop.permute.xlu2 %577 }
  0x7f   : > { %v394_v48 = vpop.permute.xlu0 %393  ;;  %v384_v49 = vpop.permute.xlu1 %383 }
  0x84   : > { %v663_v43 = vpop.permute.xlu2 %662 }
  0x87   : > { %v389_v53 = vpop.permute.xlu0 %388  ;;  %v379_v60 = vpop.permute.xlu1 %378 }
  0x8f   : > { %v653_v31 = vpop.permute.xlu0 %652  ;;  %v658_v36 = vpop.permute.xlu1 %657 }
  0xcb   : > { %v522_v44 = vpop.f32.mrf.mxu0 }
  0xcc   : > { %v551_v45 = vpop.f32.mrf.mxu1  ;;  %v523_v0 = vadd.f32 %v522_v44, %v379_v60 }
  0xcd   : > { %v552_v1 = vadd.f32 %v551_v45, %v379_v60  ;;  %v750_v60 = vld [vmem:[%s1665_s4 + $0x10] sm:$0xff] }
  0xd3   : > { %v525_v46 = vpop.f32.mrf.mxu0 }
  0xd4   : > { %v554_v47 = vpop.f32.mrf.mxu1  ;;  %v526_v62 = vadd.f32 %v525_v46, %v384_v49 }
  0xd5   : > { %v555_v63 = vadd.f32 %v554_v47, %v384_v49 }
  0xdb   : > { %v528_v50 = vpop.f32.mrf.mxu0 }
  0xdc   : > { %v557_v51 = vpop.f32.mrf.mxu1  ;;  %v529_v57 = vadd.f32 %v528_v50, %v389_v53  ;;  %v668_v50 = vpop.permute.xlu0 %667 }
  0xdd   : > { %v558_v61 = vadd.f32 %v557_v51, %v389_v53 }
  0xe3   : > { %v531_v54 = vpop.f32.mrf.mxu0 }
  0xe4   : > { %v560_v55 = vpop.f32.mrf.mxu1  ;;  %v532_v58 = vadd.f32 %v531_v54, %v394_v48 }
  0xe5   : > { %v561_v59 = vadd.f32 %v560_v55, %v394_v48 }
  0xe6   : > { %1239 = vtanh.f32 %v532_v58 }
  0xe7   : > { %1241 = vtanh.f32 %v561_v59  ;;  %v751_v59 = vld [vmem:[%s1665_s4 + $0x18] sm:$0xff] }
  0xe8   : > { %1243 = vtanh.f32 %v529_v57  ;;  %928 = vmatpush.msrb.mxu0 %v751_v59  ;;  %1213 = vmatpush.msrb.mxu1 %v751_v59 }
  0xe9   : > { %1245 = vtanh.f32 %v558_v61  ;;  %v749_v61 = vld [vmem:[%s1665_s4 + $0x8] sm:$0xff] }
  0xea   : > { %1247 = vtanh.f32 %v526_v62  ;;  %929 = vmatpush.msrb.mxu0 %v750_v60  ;;  %1216 = vmatpush.msrb.mxu1 %v750_v60  ;;  %v748_v62 = vld [vmem:[%s1665_s4] sm:$0xff] }
  0xeb   : > { %1249 = vtanh.f32 %v555_v63 }
  0xec   : > { %v1240_v3 = vpop.eup %1239  ;;  %1251 = vtanh.f32 %v523_v0  ;;  %930 = vmatpush.msrb.mxu0 %v749_v61  ;;  %1219 = vmatpush.msrb.mxu1 %v749_v61 }
  0xed   : > { %v1242_v4 = vpop.eup %1241  ;;  %1253 = vtanh.f32 %v552_v1  ;;  %604 = vmatpush.msra.mxu2 %v1240_v3 }
  0xee   : > { %v1244_v5 = vpop.eup %1243  ;;  %627 = vmatpush.msra.mxu3 %v1242_v4  ;;  %931 = vmatpush.msrb.mxu0 %v748_v62 }
  0xef   : > { %v1246_v6 = vpop.eup %1245  ;;  %605 = vmatpush.msra.mxu2 %v1244_v5  ;;  %1222 = vmatpush.msrb.mxu1 %v748_v62 }
  0xf0   : > { %v1248_v7 = vpop.eup %1247  ;;  %628 = vmatpush.msra.mxu3 %v1246_v6 }
  0xf1   : > { %v1250_v8 = vpop.eup %1249  ;;  %606 = vmatpush.msra.mxu2 %v1248_v7 }
  0xf2   : > { %v1252_v10 = vpop.eup %1251  ;;  %629 = vmatpush.msra.mxu3 %v1250_v8 }
  0xf3   : > { %v1254_v11 = vpop.eup %1253  ;;  %607 = vmatpush.msra.mxu2 %v1252_v10 }
  0xf4   : > { %630 = vmatpush.msra.mxu3 %v1254_v11  ;;  %1167 = vmatmul.msk.f32.vlgmr.msra.gmra.mxu2 %vm585_vm1, %v571_v9 }
  0xf5   : > { %1169 = vmatmul.msk.f32.vlgmr.msra.gmra.mxu3 %vm585_vm1, %v571_v9 }
  0xfc   : > { %1168 = vmatmul.msk.f32.gmra.mxu2 %vm585_vm1, %v572_v12 }
  0xfd   : > { %1170 = vmatmul.msk.f32.gmra.mxu3 %vm585_vm1, %v572_v12 }
 0x177   : > { %v609_v14 = vpop.f32.mrf.mxu2 }
 0x178   : > { %v632_v15 = vpop.f32.mrf.mxu3  ;;  %v610_v18 = vadd.f32 %v609_v14, %v578_v16 }
 0x179   : > { %v633_v21 = vadd.f32 %v632_v15, %v578_v16 }
 0x17f   : > { %v612_v17 = vpop.f32.mrf.mxu2 }
 0x180   : > { %v613_v19 = vadd.f32 %v612_v17, %v583_v13  ;;  %v635_v20 = vpop.f32.mrf.mxu3 }
 0x181   : > { %v636_v22 = vadd.f32 %v635_v20, %v583_v13 }
 0x182   : > { %1255 = vtanh.f32 %v613_v19 }
 0x183   : > { %1257 = vtanh.f32 %v636_v22 }
 0x184   : > { %1259 = vtanh.f32 %v610_v18 }
 0x185   : > { %1261 = vtanh.f32 %v633_v21 }
 0x188   : > { %v1256_v23 = vpop.eup %1255 }
 0x189   : > { %v1258_v24 = vpop.eup %1257  ;;  %696 = vmatpush.msrb.mxu2 %v1256_v23 }
 0x18a   : > { %v1260_v26 = vpop.eup %1259  ;;  %725 = vmatpush.msrb.mxu3 %v1258_v24 }
 0x18b   : > { %v1262_v27 = vpop.eup %1261  ;;  %697 = vmatpush.msrb.mxu2 %v1260_v26 }
 0x18c   : > { %726 = vmatpush.msrb.mxu3 %v1262_v27  ;;  %1171 = vmatmul.msk.f32.vlgmr.msrb.gmra.mxu2 %vm396_vm0, %v642_v25 }
 0x18d   : > { %1175 = vmatmul.msk.f32.vlgmr.msrb.gmra.mxu3 %vm396_vm0, %v642_v25  ;;  %1214 = vmatpush.msra.mxu2 %v751_v59 }
 0x18e   : > { %1215 = vmatpush.msra.mxu3 %v751_v59 }
 0x18f   : > { %1217 = vmatpush.msra.mxu2 %v750_v60 }
 0x190   : > { %1218 = vmatpush.msra.mxu3 %v750_v60 }
 0x191   : > { %1220 = vmatpush.msra.mxu2 %v749_v61 }
 0x192   : > { %1221 = vmatpush.msra.mxu3 %v749_v61 }
 0x193   : > { %1223 = vmatpush.msra.mxu2 %v748_v62 }
 0x194   : > { %1172 = vmatmul.msk.f32.gmra.mxu2 %vm396_vm0, %v643_v28  ;;  %1224 = vmatpush.msra.mxu3 %v748_v62 }
 0x195   : > { %1176 = vmatmul.msk.f32.gmra.mxu3 %vm396_vm0, %v643_v28 }
 0x19c   : > { %1173 = vmatmul.msk.f32.gmra.mxu2 %vm396_vm0, %v644_v29 }
 0x19d   : > { %1177 = vmatmul.msk.f32.gmra.mxu3 %vm396_vm0, %v644_v29 }
 0x1a4   : > { %1174 = vmatmul.msk.f32.gmra.mxu2 %vm396_vm0, %v645_v30 }
 0x1a5   : > { %1178 = vmatmul.msk.f32.gmra.mxu3 %vm396_vm0, %v645_v30  ;;  %v1545_v30 = vld [vmem:[%s1669_s8] ss:$0 sm:$0xff] }
 0x20f   : > { %v699_v32 = vpop.f32.mrf.mxu2 }
 0x210   : > { %v700_v33 = vadd.f32 %v699_v32, %v653_v31  ;;  %v728_v34 = vpop.f32.mrf.mxu3 }
 0x211   : > { %v729_v35 = vadd.f32 %v728_v34, %v653_v31 }
 0x212   : > { %1263 = vtanh.f32 %v700_v33 }
 0x213   : > { %1265 = vtanh.f32 %v729_v35 }
 0x217   : > { %v702_v37 = vpop.f32.mrf.mxu2 }
 0x218   : > { %v1264_v38 = vpop.eup %1263  ;;  %v703_v39 = vadd.f32 %v702_v37, %v658_v36  ;;  %v731_v40 = vpop.f32.mrf.mxu3 }
 0x219   : > { %v1266_v41 = vpop.eup %1265  ;;  %v732_v42 = vadd.f32 %v731_v40, %v658_v36  ;;  %756 = vxpose.xlu1.b32.start [1/4] (short) %v1264_v38, 128 }
 0x21a   : > { %1267 = vtanh.f32 %v703_v39  ;;  %788 = vxpose.xlu2.b32.start [1/4] (short) %v1266_v41, 128 }
 0x21b   : > { %1269 = vtanh.f32 %v732_v42 }
 0x21f   : > { %v705_v44 = vpop.f32.mrf.mxu2 }
 0x220   : > { %v1268_v45 = vpop.eup %1267  ;;  %v706_v46 = vadd.f32 %v705_v44, %v663_v43  ;;  %v734_v47 = vpop.f32.mrf.mxu3 }
 0x221   : > { %v1270_v48 = vpop.eup %1269  ;;  %v735_v49 = vadd.f32 %v734_v47, %v663_v43  ;;  %757 = vxpose.xlu1.b32.cont [2/4] (short) %v1268_v45, 128 }
 0x222   : > { %1271 = vtanh.f32 %v706_v46  ;;  %789 = vxpose.xlu2.b32.cont [2/4] (short) %v1270_v48, 128 }
 0x223   : > { %1273 = vtanh.f32 %v735_v49 }
 0x227   : > { %v708_v51 = vpop.f32.mrf.mxu2 }
 0x228   : > { %v1272_v52 = vpop.eup %1271  ;;  %v709_v53 = vadd.f32 %v708_v51, %v668_v50  ;;  %v737_v54 = vpop.f32.mrf.mxu3 }
 0x229   : > { %v1274_v55 = vpop.eup %1273  ;;  %v738_v56 = vadd.f32 %v737_v54, %v668_v50  ;;  %758 = vxpose.xlu1.b32.cont [3/4] (short) %v1272_v52, 128 }
 0x22a   : > { %1275 = vtanh.f32 %v709_v53  ;;  %790 = vxpose.xlu2.b32.cont [3/4] (short) %v1274_v55, 128 }
 0x22b   : > { %1277 = vtanh.f32 %v738_v56 }
 0x230   : > { %v1276_v57 = vpop.eup %1275 }
 0x231   : > { %v1278_v58 = vpop.eup %1277  ;;  %759 = vxpose.xlu1.b32.end [4/4] (short) %v1276_v57, 128 }
 0x232   : > { %791 = vxpose.xlu2.b32.end [4/4] (short) %v1278_v58, 128 }
 0x2b3   : > { %v804_v1 = vpop.trf.xlu2 }
 0x2bb   : > { %v805_v3 = vpop.trf.xlu2 }
 0x2bd   : > { %v772_v63 = vpop.trf.xlu1 }
 0x2be   : > { %1179 = vmatmul.msk.f32.vlgmr.msrb.gmra.mxu0 %vm585_vm1, %v772_v63 }
 0x2c3   : > { %v806_v5 = vpop.trf.xlu2 }
 0x2c5   : > { %v773_v0 = vpop.trf.xlu1 }
 0x2c6   : > { %1180 = vmatmul.msk.f32.gmra.mxu0 %vm585_vm1, %v773_v0 }
 0x2cb   : > { %v1517_v7 = vpop.trf.xlu2 }
 0x2cd   : > { %v774_v2 = vpop.trf.xlu1 }
 0x2ce   : > { %1181 = vmatmul.msk.f32.gmra.mxu0 %vm585_vm1, %v774_v2 }
 0x2d3   : > { %v1520_v9 = vpop.trf.xlu2 }
 0x2d5   : > { %v775_v4 = vpop.trf.xlu1 }
 0x2d6   : > { %1182 = vmatmul.msk.f32.gmra.mxu0 %vm585_vm1, %v775_v4 }
 0x2db   : > { %v809_v11 = vpop.trf.xlu2 }
 0x2dc   : > { %1200 = vmatmul.msk.f32.vlgmr.msra.gmra.mxu3 %vm585_vm1, %v809_v11 }
 0x2dd   : > { %v776_v6 = vpop.trf.xlu1 }
 0x2de   : > { %1183 = vmatmul.msk.f32.gmra.mxu0 %vm585_vm1, %v776_v6 }
 0x2e3   : > { %v810_v13 = vpop.trf.xlu2 }
 0x2e4   : > { %1201 = vmatmul.msk.f32.gmra.mxu3 %vm585_vm1, %v810_v13 }
 0x2e5   : > { %v777_v8 = vpop.trf.xlu1 }
 0x2e6   : > { %1184 = vmatmul.msk.f32.gmra.mxu0 %vm585_vm1, %v777_v8 }
 0x2eb   : > { %v811_v15 = vpop.trf.xlu2 }
 0x2ec   : > { %1202 = vmatmul.msk.f32.gmra.mxu3 %vm585_vm1, %v811_v15 }
 0x2ed   : > { %v778_v10 = vpop.trf.xlu1 }
 0x2ee   : > { %1185 = vmatmul.msk.f32.vlgmr.msrb.gmra.mxu1 %vm585_vm1, %v778_v10 }
 0x2f3   : > { %v812_v17 = vpop.trf.xlu2 }
 0x2f4   : > { %1203 = vmatmul.msk.f32.gmra.mxu3 %vm585_vm1, %v812_v17 }
 0x2f5   : > { %v779_v12 = vpop.trf.xlu1 }
 0x2f6   : > { %1186 = vmatmul.msk.f32.gmra.mxu1 %vm585_vm1, %v779_v12 }
 0x2fb   : > { %v813_v19 = vpop.trf.xlu2 }
 0x2fc   : > { %1204 = vmatmul.msk.f32.gmra.mxu3 %vm585_vm1, %v813_v19 }
 0x2fd   : > { %v780_v14 = vpop.trf.xlu1 }
 0x2fe   : > { %1187 = vmatmul.msk.f32.gmra.mxu1 %vm585_vm1, %v780_v14 }
 0x303   : > { %v814_v21 = vpop.trf.xlu2 }
 0x304   : > { %1205 = vmatmul.msk.f32.gmra.mxu3 %vm585_vm1, %v814_v21 }
 0x305   : > { %v781_v16 = vpop.trf.xlu1 }
 0x306   : > { %1188 = vmatmul.msk.f32.gmra.mxu1 %vm585_vm1, %v781_v16 }
 0x30b   : > { %v815_v23 = vpop.trf.xlu2 }
 0x30c   : > { %1206 = vmatmul.msk.f32.gmra.mxu3 %vm585_vm1, %v815_v23 }
 0x30d   : > { %v782_v18 = vpop.trf.xlu1 }
 0x30e   : > { %1189 = vmatmul.msk.f32.vlgmr.msra.gmra.mxu2 %vm585_vm1, %v782_v18 }
 0x313   : > { %v816_v25 = vpop.trf.xlu2 }
 0x314   : > { %1207 = vmatmul.msk.f32.gmra.mxu3 %vm585_vm1, %v816_v25 }
 0x315   : > { %v783_v20 = vpop.trf.xlu1 }
 0x316   : > { %1190 = vmatmul.msk.f32.gmra.mxu2 %vm585_vm1, %v783_v20 }
 0x31b   : > { %v817_v27 = vpop.trf.xlu2 }
 0x31c   : > { %1208 = vmatmul.msk.f32.gmra.mxu3 %vm585_vm1, %v817_v27 }
 0x31d   : > { %v784_v22 = vpop.trf.xlu1 }
 0x31e   : > { %1191 = vmatmul.msk.f32.gmra.mxu2 %vm585_vm1, %v784_v22 }
 0x323   : > { %v818_v29 = vpop.trf.xlu2 }
 0x324   : > { %1209 = vmatmul.msk.f32.gmra.mxu3 %vm585_vm1, %v818_v29 }
 0x325   : > { %v785_v24 = vpop.trf.xlu1 }
 0x326   : > { %1192 = vmatmul.msk.f32.gmra.mxu2 %vm585_vm1, %v785_v24 }
 0x32b   : > { %v819_v33 = vpop.trf.xlu2 }
 0x32c   : > { %1210 = vmatmul.msk.f32.gmra.mxu3 %vm585_vm1, %v819_v33 }
 0x32d   : > { %v786_v26 = vpop.trf.xlu1 }
 0x32e   : > { %1193 = vmatmul.msk.f32.gmra.mxu2 %vm585_vm1, %v786_v26 }
 0x335   : > { %v787_v28 = vpop.trf.xlu1 }
 0x336   : > { %1194 = vmatmul.msk.f32.gmra.mxu2 %vm585_vm1, %v787_v28 }
 0x33b   : > { %v933_v31 = vpop.f32.mrf.mxu0 }
 0x33c   : > { %v934_v32 = vadd.f32 %v1545_v30, %v933_v31 }
 0x33e   : > { %1195 = vmatmul.msk.f32.gmra.mxu2 %vm585_vm1, %v804_v1  ;;  %1030 = vst.msk [vmem:[%s1552_s14] sm:$0xff] %vm1029_vm2, %v934_v32 }
 0x343   : > { %v936_v34 = vpop.f32.mrf.mxu0 }
 0x344   : > { %v937_v35 = vadd.f32 %v1545_v30, %v936_v34 }
 0x346   : > { %1196 = vmatmul.msk.f32.gmra.mxu2 %vm585_vm1, %v805_v3  ;;  %1031 = vst.msk [vmem:[%s1552_s14 + $0x8] sm:$0xff] %vm1029_vm2, %v937_v35 }
 0x34b   : > { %v939_v36 = vpop.f32.mrf.mxu0 }
 0x34c   : > { %v940_v37 = vadd.f32 %v1545_v30, %v939_v36 }
 0x34e   : > { %1197 = vmatmul.msk.f32.gmra.mxu2 %vm585_vm1, %v806_v5  ;;  %1032 = vst.msk [vmem:[%s1552_s14 + $0x10] sm:$0xff] %vm1029_vm2, %v940_v37 }
 0x353   : > { %v942_v38 = vpop.f32.mrf.mxu0 }
 0x354   : > { %v943_v39 = vadd.f32 %v1545_v30, %v942_v38 }
 0x356   : > { %1198 = vmatmul.msk.f32.gmra.mxu2 %vm585_vm1, %v1517_v7  ;;  %1033 = vst.msk [vmem:[%s1552_s14 + $0x18] sm:$0xff] %vm1029_vm2, %v943_v39 }
 0x35b   : > { %v945_v40 = vpop.f32.mrf.mxu0 }
 0x35c   : > { %v946_v41 = vadd.f32 %v1545_v30, %v945_v40 }
 0x35e   : > { %1199 = vmatmul.msk.f32.gmra.mxu2 %vm585_vm1, %v1520_v9  ;;  %1034 = vst.msk [vmem:[%s1552_s14 + $0x20] sm:$0xff] %vm1029_vm2, %v946_v41 }
 0x35f   : > { %v996_v46 = vpop.f32.mrf.mxu3 }
 0x360   : > { %v997_v48 = vadd.f32 %v1545_v30, %v996_v46 }
 0x362   : > { %1051 = vst.msk [vmem:[%s1552_s14 + $0xa8] sm:$0xff] %vm1029_vm2, %v997_v48 }
 0x363   : > { %v948_v42 = vpop.f32.mrf.mxu0 }
 0x364   : > { %v949_v43 = vadd.f32 %v1545_v30, %v948_v42 }
 0x366   : > { %1035 = vst.msk [vmem:[%s1552_s14 + $0x28] sm:$0xff] %vm1029_vm2, %v949_v43 }
 0x367   : > { %v999_v50 = vpop.f32.mrf.mxu3 }
 0x368   : > { %v1000_v52 = vadd.f32 %v1545_v30, %v999_v50 }
 0x36a   : > { %1052 = vst.msk [vmem:[%s1552_s14 + $0xb0] sm:$0xff] %vm1029_vm2, %v1000_v52 }
 0x36b   : > { %v951_v44 = vpop.f32.mrf.mxu1 }
 0x36c   : > { %v952_v45 = vadd.f32 %v1545_v30, %v951_v44 }
 0x36e   : > { %1036 = vst.msk [vmem:[%s1552_s14 + $0x30] sm:$0xff] %vm1029_vm2, %v952_v45 }
 0x36f   : > { %v1002_v54 = vpop.f32.mrf.mxu3 }
 0x370   : > { %v1003_v56 = vadd.f32 %v1545_v30, %v1002_v54 }
 0x372   : > { %1053 = vst.msk [vmem:[%s1552_s14 + $0xb8] sm:$0xff] %vm1029_vm2, %v1003_v56 }
 0x373   : > { %v954_v47 = vpop.f32.mrf.mxu1 }
 0x374   : > { %v955_v49 = vadd.f32 %v1545_v30, %v954_v47 }
 0x376   : > { %1037 = vst.msk [vmem:[%s1552_s14 + $0x38] sm:$0xff] %vm1029_vm2, %v955_v49 }
 0x377   : > { %v1005_v58 = vpop.f32.mrf.mxu3 }
 0x378   : > { %v1006_v59 = vadd.f32 %v1545_v30, %v1005_v58 }
 0x37a   : > { %1054 = vst.msk [vmem:[%s1552_s14 + $0xc0] sm:$0xff] %vm1029_vm2, %v1006_v59 }
 0x37b   : > { %v957_v51 = vpop.f32.mrf.mxu1 }
 0x37c   : > { %v958_v53 = vadd.f32 %v1545_v30, %v957_v51 }
 0x37e   : > { %1038 = vst.msk [vmem:[%s1552_s14 + $0x40] sm:$0xff] %vm1029_vm2, %v958_v53 }
 0x37f   : > { %v1008_v62 = vpop.f32.mrf.mxu3 }
 0x380   : > { %v1009_v63 = vadd.f32 %v1545_v30, %v1008_v62 }
 0x382   : > { %1055 = vst.msk [vmem:[%s1552_s14 + $0xc8] sm:$0xff] %vm1029_vm2, %v1009_v63 }
 0x383   : > { %v960_v55 = vpop.f32.mrf.mxu1 }
 0x384   : > { %v961_v57 = vadd.f32 %v1545_v30, %v960_v55 }
 0x386   : > { %1039 = vst.msk [vmem:[%s1552_s14 + $0x48] sm:$0xff] %vm1029_vm2, %v961_v57 }
 0x387   : > { %v1011_v2 = vpop.f32.mrf.mxu3 }
 0x388   : > { %v1012_v3 = vadd.f32 %v1545_v30, %v1011_v2 }
 0x38a   : > { %1056 = vst.msk [vmem:[%s1552_s14 + $0xd0] sm:$0xff] %vm1029_vm2, %v1012_v3 }
 0x38f   : > { %v1014_v6 = vpop.f32.mrf.mxu3 }
 0x390   : > { %v1015_v7 = vadd.f32 %v1545_v30, %v1014_v6 }
 0x391   : > { %v963_v60 = vpop.f32.mrf.mxu2 }
 0x392   : > { %v964_v61 = vadd.f32 %v1545_v30, %v963_v60  ;;  %1057 = vst.msk [vmem:[%s1552_s14 + $0xd8] sm:$0xff] %vm1029_vm2, %v1015_v7 }
 0x394   : > { %1040 = vst.msk [vmem:[%s1552_s14 + $0x50] sm:$0xff] %vm1029_vm2, %v964_v61 }
 0x397   : > { %v1017_v10 = vpop.f32.mrf.mxu3 }
 0x398   : > { %v1018_v11 = vadd.f32 %v1545_v30, %v1017_v10 }
 0x399   : > { %v966_v0 = vpop.f32.mrf.mxu2 }
 0x39a   : > { %v967_v1 = vadd.f32 %v1545_v30, %v966_v0  ;;  %1058 = vst.msk [vmem:[%s1552_s14 + $0xe0] sm:$0xff] %vm1029_vm2, %v1018_v11 }
 0x39c   : > { %1041 = vst.msk [vmem:[%s1552_s14 + $0x58] sm:$0xff] %vm1029_vm2, %v967_v1 }
 0x39f   : > { %v1020_v14 = vpop.f32.mrf.mxu3 }
 0x3a0   : > { %v1021_v15 = vadd.f32 %v1545_v30, %v1020_v14 }
 0x3a1   : > { %v969_v4 = vpop.f32.mrf.mxu2 }
 0x3a2   : > { %v970_v5 = vadd.f32 %v1545_v30, %v969_v4  ;;  %1059 = vst.msk [vmem:[%s1552_s14 + $0xe8] sm:$0xff] %vm1029_vm2, %v1021_v15 }
 0x3a4   : > { %1042 = vst.msk [vmem:[%s1552_s14 + $0x60] sm:$0xff] %vm1029_vm2, %v970_v5 }
 0x3a7   : > { %v1023_v18 = vpop.f32.mrf.mxu3 }
 0x3a8   : > { %v1024_v19 = vadd.f32 %v1545_v30, %v1023_v18 }
 0x3a9   : > { %v972_v8 = vpop.f32.mrf.mxu2 }
 0x3aa   : > { %v973_v9 = vadd.f32 %v1545_v30, %v972_v8  ;;  %1060 = vst.msk [vmem:[%s1552_s14 + $0xf0] sm:$0xff] %vm1029_vm2, %v1024_v19 }
 0x3ac   : > { %1043 = vst.msk [vmem:[%s1552_s14 + $0x68] sm:$0xff] %vm1029_vm2, %v973_v9 }
 0x3af   : > { %v1026_v22 = vpop.f32.mrf.mxu3 }
 0x3b0   : > { %v1027_v23 = vadd.f32 %v1545_v30, %v1026_v22 }
 0x3b1   : > { %v975_v12 = vpop.f32.mrf.mxu2 }
 0x3b2   : > { %v976_v13 = vadd.f32 %v1545_v30, %v975_v12  ;;  %1061 = vst.msk [vmem:[%s1552_s14 + $0xf8] sm:$0xff] %vm1029_vm2, %v1027_v23 }
 0x3b4   : > { %1044 = vst.msk [vmem:[%s1552_s14 + $0x70] sm:$0xff] %vm1029_vm2, %v976_v13 }
 0x3b9   : > { %v978_v16 = vpop.f32.mrf.mxu2 }
 0x3ba   : > { %v979_v17 = vadd.f32 %v1545_v30, %v978_v16 }
 0x3bc   : > { %1045 = vst.msk [vmem:[%s1552_s14 + $0x78] sm:$0xff] %vm1029_vm2, %v979_v17 }
 0x3c1   : > { %v981_v20 = vpop.f32.mrf.mxu2 }
 0x3c2   : > { %v982_v21 = vadd.f32 %v1545_v30, %v981_v20 }
 0x3c4   : > { %1046 = vst.msk [vmem:[%s1552_s14 + $0x80] sm:$0xff] %vm1029_vm2, %v982_v21 }
 0x3c9   : > { %v984_v24 = vpop.f32.mrf.mxu2 }
 0x3ca   : > { %v985_v25 = vadd.f32 %v1545_v30, %v984_v24 }
 0x3cc   : > { %1047 = vst.msk [vmem:[%s1552_s14 + $0x88] sm:$0xff] %vm1029_vm2, %v985_v25 }
 0x3d1   : > { %v987_v26 = vpop.f32.mrf.mxu2 }
 0x3d2   : > { %v988_v27 = vadd.f32 %v1545_v30, %v987_v26 }
 0x3d4   : > { %1048 = vst.msk [vmem:[%s1552_s14 + $0x90] sm:$0xff] %vm1029_vm2, %v988_v27 }
 0x3d9   : > { %v990_v28 = vpop.f32.mrf.mxu2 }
 0x3da   : > { %v991_v29 = vadd.f32 %v1545_v30, %v990_v28 }
 0x3dc   : > { %1049 = vst.msk [vmem:[%s1552_s14 + $0x98] sm:$0xff] %vm1029_vm2, %v991_v29 }
 0x3e1   : > { %v993_v31 = vpop.f32.mrf.mxu2 }
 0x3e2   : > { %v994_v32 = vadd.f32 %v1545_v30, %v993_v31 }
 0x3e4   : > { %1050 = vst.msk [vmem:[%s1552_s14 + $0xa0] sm:$0xff] %vm1029_vm2, %v994_v32 }
 0x3e5 PF: > { %s19_s30 = sadd.s32 1, %s1285_s30  }
 0x3e6   : > { %p16_p4 = scmp.ge.s32.totalorder %s19_s30, 4  }
 0x3e8   :  { %18 = sbr.rel (!%p16_p4) target bundleno = 1 (0x1), region = 86 }

</bundles_post_ra>
